<compile_context>
chip_gen: v6e
topology: v6e:2x2x1
jax: 0.10.0
libtpu: 0.0.40
codegen_flags: <defaults>
</compile_context>

<pallas_src>
import jax
import jax.numpy as jnp
from jax import lax
from jax.experimental import pallas as pl
from jax.experimental.pallas import tpu as pltpu


def _round_up(x, m):
    return (x + m - 1) // m * m


def _vmem_limit_bytes():
    try:
        phys = pltpu.get_tpu_info().vmem_capacity_bytes
    except Exception:
        phys = 64 * 1024 * 1024
    # v5e/v6e (128 MiB physical) -> 64 MiB limit; v7x (64 MiB) -> 48 MiB.
    return int(min(64 * 1024 * 1024, (phys * 3) // 4))


def _pick_batch_group(N, C, Ppad, in_bytes, budget):
    """Number of batch images folded into one grid step: the largest divisor of N that
    keeps the grid >= 2 (even if possible, for v7x's two TensorCores) and fits VMEM."""
    per_img = C * Ppad

    def est(nb):
        return (3 * 2 * nb * per_img * in_bytes      # v,h inputs, up to 3 buffers each
                + 2 * 2 * nb * per_img * 4           # v,h f32 outputs, double buffered
                + 16 * nb * per_img * 4)             # live in-kernel intermediates

    divs = [d for d in range(N, 0, -1)
            if N % d == 0 and N // d >= 2 and est(d) <= budget]
    if not divs:
        return 1
    even = [d for d in divs if (N // d) % 2 == 0]
    return even[0] if even else divs[0]


# ----------------------------- Pallas kernel --------------------------------
def _make_kernel(NB, W, C):
    def kernel(v_ref, h_ref, m_ref, wv_ref, wh_ref, w1_ref,
               bv_ref, bhv_ref, b1_ref, vout_ref, hout_ref):
        P = v_ref.shape[-1]
        m_top, m_left, m_right = m_ref[0], m_ref[1], m_ref[2]    # each (1, P)
        wv = wv_ref[...]        # (2C, 6C)  fused vertical-tap weights
        wh = wh_ref[...]        # (2C, 4C)  fused horizontal + vert->horiz weights
        w1 = w1_ref[...]        # (C, C)
        bv = bv_ref[...]        # (2C, 1) f32
        bhv = bhv_ref[...]      # (2C, 1) f32
        b1 = b1_ref[...]        # (C, 1)  f32

        def sig(x):             # sigmoid via a single EUP tanh (exact identity)
            return 0.5 * jnp.tanh(0.5 * x) + 0.5

        # TODO(synk): for very large C, tile the pixel (lane) axis with an inner
        # fori_loop so the live tap/feature slabs stay within the 64-vreg file.
        for b in range(NB):
            v = v_ref[b]                                   # (C, P), compute dtype
            h = h_ref[b]

            # centre-row taps (kh = 1): left / centre / right neighbours.
            t10 = pltpu.roll(v, shift=1, axis=1) * m_left
            t11 = v
            t12 = pltpu.roll(v, shift=P - 1, axis=1) * m_right
            # row-above taps (kh = 0): shift one image row down + zero the top row.
            t00 = pltpu.roll(t10, shift=W, axis=1) * m_top
            t01 = pltpu.roll(t11, shift=W, axis=1) * m_top
            t02 = pltpu.roll(t12, shift=W, axis=1) * m_top

            # ---- vertical stack: one K-fused MXU dot over all 6 masked taps ----
            v_taps = jnp.concatenate([t00, t01, t02, t10, t11, t12], axis=0)  # (6C, P)
            v_feat = jnp.dot(wv, v_taps, preferred_element_type=jnp.float32) + bv
            v_out = jnp.tanh(v_feat[:C]) * sig(v_feat[C:])

            # ---- horizontal stack: one K-fused dot over [left tap, centre, v_feat] --
            h_tap0 = pltpu.roll(h, shift=1, axis=1) * m_left
            h_all = jnp.concatenate([h_tap0, h, v_feat.astype(h.dtype)], axis=0)
            h_feat = jnp.dot(wh, h_all, preferred_element_type=jnp.float32) + bhv
            h_act = jnp.tanh(h_feat[:C]) * sig(h_feat[C:])

            h_out = (jnp.dot(w1, h_act.astype(w1.dtype),
                             preferred_element_type=jnp.float32)
                     + b1 + h.astype(jnp.float32))

            vout_ref[b] = v_out.astype(vout_ref.dtype)
            hout_ref[b] = h_out.astype(hout_ref.dtype)

    return kernel


# ------------------------------ wrappers --------------------------------------
def gated_masked_conv_pixels(v_px, h_px, params, *, image_width,
                             compute_dtype=jnp.float32, out_dtype=jnp.float32):
    """Core entry point on the resident lane-dense layout.

    v_px / h_px: (N, C, P) slabs with P = H*W row-major pixels (NCHW bytes, minor dims
    merged).  Stacked GatedMaskedConv layers should stay in this layout and convert
    to/from NCHW only once at the network boundary."""
    N, C, P = v_px.shape
    W = image_width
    c2 = 2 * C
    Ppad = _round_up(max(P, 128), 128)          # lane-dense outputs (unmasked vst)
    in_bytes = jnp.dtype(compute_dtype).itemsize

    v_in = v_px.astype(compute_dtype)
    h_in = h_px.astype(compute_dtype)
    if Ppad != P:
        pad = ((0, 0), (0, 0), (0, Ppad - P))
        v_in = jnp.pad(v_in, pad)
        h_in = jnp.pad(h_in, pad)

    # boundary masks: 0 on the top image row / left column / right column.
    pix = jnp.arange(Ppad, dtype=jnp.int32)
    col = pix % W
    masks = jnp.stack([pix >= W, col != 0, col != W - 1])          # (3, Ppad)
    masks = masks[:, None, :].astype(compute_dtype)                # (3, 1, Ppad)

    # fused per-tap weights; column blocks ordered exactly like the in-kernel tap slab.
    wv4 = params['wv']                          # (2C, C, 3, 3) OIHW, kh=2 masked off
    WV = jnp.concatenate([wv4[:, :, 0, 0], wv4[:, :, 0, 1], wv4[:, :, 0, 2],
                          wv4[:, :, 1, 0], wv4[:, :, 1, 1], wv4[:, :, 1, 2]],
                         axis=1).astype(compute_dtype)             # (2C, 6C)
    wh4 = params['wh']                          # (2C, C, 1, 3), kw=2 masked off
    wvh = params['wvh'][:, :, 0, 0]             # (2C, 2C) 1x1 vert->horiz
    WH = jnp.concatenate([wh4[:, :, 0, 0], wh4[:, :, 0, 1], wvh],
                         axis=1).astype(compute_dtype)             # (2C, 4C)
    W1 = params['w1'][:, :, 0, 0].astype(compute_dtype)            # (C, C)
    BV = params['bv'].reshape(c2, 1).astype(jnp.float32)
    BHV = (params['bh'] + params['bvh']).reshape(c2, 1).astype(jnp.float32)
    B1 = params['b1'].reshape(C, 1).astype(jnp.float32)

    vmem_limit = _vmem_limit_bytes()
    const_bytes = ((WV.size + WH.size + W1.size + masks.size) * in_bytes
                   + (BV.size + BHV.size + B1.size) * 4)
    budget = max((vmem_limit * 3) // 4 - const_bytes, 1 << 20)
    NB = _pick_batch_group(N, C, Ppad, in_bytes, budget)
    G = N // NB

    kernel = _make_kernel(NB, W, C)

    data_buf = pl.Buffered(min(3, max(G, 1)))   # deeper input pipelining on long grids

    def data_spec():
        return pl.BlockSpec((NB, C, Ppad), lambda i: (i, 0, 0), pipeline_mode=data_buf)

    def const_spec(shape):                      # grid-invariant -> single buffered
        nd = len(shape)
        return pl.BlockSpec(shape, lambda i, _n=nd: (0,) * _n,
                            pipeline_mode=pl.Buffered(1))

    out_spec = pl.BlockSpec((NB, C, Ppad), lambda i: (i, 0, 0))
    out_shape = jax.ShapeDtypeStruct((N, C, Ppad), out_dtype)

    v_o, h_o = pl.pallas_call(
        kernel,
        out_shape=(out_shape, out_shape),
        grid=(G,),
        in_specs=[data_spec(), data_spec(),
                  const_spec(masks.shape), const_spec(WV.shape),
                  const_spec(WH.shape), const_spec(W1.shape),
                  const_spec(BV.shape), const_spec(BHV.shape),
                  const_spec(B1.shape)],
        out_specs=(out_spec, out_spec),
        compiler_params=pltpu.CompilerParams(
            dimension_semantics=("parallel",),
            vmem_limit_bytes=vmem_limit),
    )(v_in, h_in, masks, WV, WH, W1, BV, BHV, B1)

    if Ppad != P:
        v_o = v_o[:, :, :P]
        h_o = h_o[:, :, :P]
    return v_o, h_o


def gated_masked_conv(v_stack, h_stack, params, *, compute_dtype=jnp.float32):
    """NCHW wrapper (same layout as the PyTorch module).  v_stack / h_stack:
    (N, C, H, W).  Returns (v_out, h_out) in NCHW.  Chained layers should call
    gated_masked_conv_pixels() directly to keep the lane-dense slab resident."""
    N, C, H, W = v_stack.shape
    v_px = v_stack.reshape(N, C, H * W)
    h_px = h_stack.reshape(N, C, H * W)
    v_o, h_o = gated_masked_conv_pixels(v_px, h_px, params, image_width=W,
                                        compute_dtype=compute_dtype)
    return v_o.reshape(N, C, H, W), h_o.reshape(N, C, H, W)


# --------------------------- pure-JAX reference -------------------------------
def reference(v_stack, h_stack, params):
    C = v_stack.shape[1]
    mask_v = jnp.ones((3, 3), jnp.float32).at[2:, :].set(0.0)
    mask_h = jnp.ones((1, 3), jnp.float32).at[0, 2:].set(0.0)

    def conv(x, w, b, pad):
        y = lax.conv_general_dilated(x, w, (1, 1), pad,
                                     dimension_numbers=('NCHW', 'OIHW', 'NCHW'))
        return y + b[None, :, None, None]

    v_feat = conv(v_stack, params['wv'] * mask_v[None, None], params['bv'],
                  [(1, 1), (1, 1)])
    v_out = jnp.tanh(v_feat[:, :C]) * jax.nn.sigmoid(v_feat[:, C:])
    h_feat = conv(h_stack, params['wh'] * mask_h[None, None], params['bh'],
                  [(0, 0), (1, 1)])
    h_feat = h_feat + conv(v_feat, params['wvh'], params['bvh'], [(0, 0), (0, 0)])
    h = jnp.tanh(h_feat[:, :C]) * jax.nn.sigmoid(h_feat[:, C:])
    h_out = conv(h, params['w1'], params['b1'], [(0, 0), (0, 0)]) + h_stack
    return v_out, h_out


# ------------------------------ param init ------------------------------------
def init_params(key, c_in):
    ks = jax.random.split(key, 8)
    c2 = 2 * c_in

    def u(k, shape, fan_in):
        b = 1.0 / (fan_in ** 0.5)
        return jax.random.uniform(k, shape, jnp.float32, -b, b)

    return dict(
        wv=u(ks[0], (c2, c_in, 3, 3), c_in * 9), bv=u(ks[1], (c2,), c_in * 9),
        wh=u(ks[2], (c2, c_in, 1, 3), c_in * 3), bh=u(ks[3], (c2,), c_in * 3),
        wvh=u(ks[4], (c2, c2, 1, 1), c2), bvh=u(ks[5], (c2,), c2),
        w1=u(ks[6], (c_in, c_in, 1, 1), c_in), b1=u(ks[7], (c_in,), c_in),
    )


if __name__ == "__main__":
    key = jax.random.PRNGKey(0)
    k_v, k_h, k_p = jax.random.split(key, 3)
    N, C, H, W = 2, 4, 16, 16
    v_stack = jax.random.normal(k_v, (N, C, H, W), jnp.float32)
    h_stack = jax.random.normal(k_h, (N, C, H, W), jnp.float32)
    params = init_params(k_p, C)

    fwd = jax.jit(lambda v, h: gated_masked_conv(v, h, params))
    v_out, h_out = fwd(v_stack, h_stack)
    jax.block_until_ready((v_out, h_out))

    v_ref, h_ref = reference(v_stack, h_stack, params)
    dv = float(jnp.max(jnp.abs(v_out - v_ref)))
    dh = float(jnp.max(jnp.abs(h_out - h_ref)))
    assert jnp.allclose(v_out, v_ref, atol=1e-5, rtol=1e-5), f"v_out max|diff|={dv}"
    assert jnp.allclose(h_out, h_ref, atol=1e-5, rtol=1e-5), f"h_out max|diff|={dh}"
    print("KERNEL_OK")
</pallas_src>

<mosaic_0001>
module attributes {stable_mosaic.version = 11 : i64} {
  func.func @kernel(%arg0: i32, %arg1: memref<1x4x256xf32, #tpu.memory_space<vmem>>, %arg2: memref<1x4x256xf32, #tpu.memory_space<vmem>>, %arg3: memref<3x1x256xf32, #tpu.memory_space<vmem>>, %arg4: memref<8x24xf32, #tpu.memory_space<vmem>>, %arg5: memref<8x16xf32, #tpu.memory_space<vmem>>, %arg6: memref<4x4xf32, #tpu.memory_space<vmem>>, %arg7: memref<8x1xf32, #tpu.memory_space<vmem>>, %arg8: memref<8x1xf32, #tpu.memory_space<vmem>>, %arg9: memref<4x1xf32, #tpu.memory_space<vmem>>, %arg10: memref<1x4x256xf32, #tpu.memory_space<vmem>>, %arg11: memref<1x4x256xf32, #tpu.memory_space<vmem>>) attributes {dimension_semantics = [#tpu.dimension_semantics<parallel>], iteration_bounds = array<i64: 2>, scalar_prefetch = 0 : i64, scratch_operands = 0 : i64, tpu.core_type = #tpu.core_type<tc>, window_params = [{pipeline_mode = #tpu.pipeline_mode<double_buffered>, transform_indices = @transform_0, window_bounds = array<i64: 1, 4, 256>}, {pipeline_mode = #tpu.pipeline_mode<double_buffered>, transform_indices = @transform_1, window_bounds = array<i64: 1, 4, 256>}, {pipeline_mode = #tpu.pipeline_mode<synchronous>, transform_indices = @transform_2, window_bounds = array<i64: 3, 1, 256>}, {pipeline_mode = #tpu.pipeline_mode<synchronous>, transform_indices = @transform_3, window_bounds = array<i64: 8, 24>}, {pipeline_mode = #tpu.pipeline_mode<synchronous>, transform_indices = @transform_4, window_bounds = array<i64: 8, 16>}, {pipeline_mode = #tpu.pipeline_mode<synchronous>, transform_indices = @transform_5, window_bounds = array<i64: 4, 4>}, {pipeline_mode = #tpu.pipeline_mode<synchronous>, transform_indices = @transform_6, window_bounds = array<i64: 8, 1>}, {pipeline_mode = #tpu.pipeline_mode<synchronous>, transform_indices = @transform_7, window_bounds = array<i64: 8, 1>}, {pipeline_mode = #tpu.pipeline_mode<synchronous>, transform_indices = @transform_8, window_bounds = array<i64: 4, 1>}, {transform_indices = @transform_9, window_bounds = array<i64: 1, 4, 256>}, {transform_indices = @transform_10, window_bounds = array<i64: 1, 4, 256>}]} {
    %c0 = arith.constant 0 : index
    %c0_0 = arith.constant 0 : index
    %c0_1 = arith.constant 0 : index
    %0 = vector.load %arg3[%c0, %c0_0, %c0_1] : memref<3x1x256xf32, #tpu.memory_space<vmem>>, vector<1x1x256xf32>
    %1 = vector.shape_cast %0 : vector<1x1x256xf32> to vector<1x256xf32>
    %c1 = arith.constant 1 : index
    %c0_2 = arith.constant 0 : index
    %c0_3 = arith.constant 0 : index
    %2 = vector.load %arg3[%c1, %c0_2, %c0_3] : memref<3x1x256xf32, #tpu.memory_space<vmem>>, vector<1x1x256xf32>
    %3 = vector.shape_cast %2 : vector<1x1x256xf32> to vector<1x256xf32>
    %c2 = arith.constant 2 : index
    %c0_4 = arith.constant 0 : index
    %c0_5 = arith.constant 0 : index
    %4 = vector.load %arg3[%c2, %c0_4, %c0_5] : memref<3x1x256xf32, #tpu.memory_space<vmem>>, vector<1x1x256xf32>
    %5 = vector.shape_cast %4 : vector<1x1x256xf32> to vector<1x256xf32>
    %c0_6 = arith.constant 0 : index
    %c0_7 = arith.constant 0 : index
    %6 = vector.load %arg4[%c0_6, %c0_7] : memref<8x24xf32, #tpu.memory_space<vmem>>, vector<8x24xf32>
    %c0_8 = arith.constant 0 : index
    %c0_9 = arith.constant 0 : index
    %7 = vector.load %arg5[%c0_8, %c0_9] : memref<8x16xf32, #tpu.memory_space<vmem>>, vector<8x16xf32>
    %c0_10 = arith.constant 0 : index
    %c0_11 = arith.constant 0 : index
    %8 = vector.load %arg6[%c0_10, %c0_11] : memref<4x4xf32, #tpu.memory_space<vmem>>, vector<4x4xf32>
    %c0_12 = arith.constant 0 : index
    %c0_13 = arith.constant 0 : index
    %9 = vector.load %arg7[%c0_12, %c0_13] : memref<8x1xf32, #tpu.memory_space<vmem>>, vector<8x1xf32>
    %c0_14 = arith.constant 0 : index
    %c0_15 = arith.constant 0 : index
    %10 = vector.load %arg8[%c0_14, %c0_15] : memref<8x1xf32, #tpu.memory_space<vmem>>, vector<8x1xf32>
    %c0_16 = arith.constant 0 : index
    %c0_17 = arith.constant 0 : index
    %11 = vector.load %arg9[%c0_16, %c0_17] : memref<4x1xf32, #tpu.memory_space<vmem>>, vector<4x1xf32>
    %c0_18 = arith.constant 0 : index
    %c0_19 = arith.constant 0 : index
    %c0_20 = arith.constant 0 : index
    %12 = vector.load %arg1[%c0_18, %c0_19, %c0_20] : memref<1x4x256xf32, #tpu.memory_space<vmem>>, vector<1x4x256xf32>
    %13 = vector.shape_cast %12 : vector<1x4x256xf32> to vector<4x256xf32>
    %c0_21 = arith.constant 0 : index
    %c0_22 = arith.constant 0 : index
    %c0_23 = arith.constant 0 : index
    %14 = vector.load %arg2[%c0_21, %c0_22, %c0_23] : memref<1x4x256xf32, #tpu.memory_space<vmem>>, vector<1x4x256xf32>
    %15 = vector.shape_cast %14 : vector<1x4x256xf32> to vector<4x256xf32>
    %c1_i32 = arith.constant 1 : i32
    %16 = tpu.dynamic_rotate %13 by %c1_i32 dim 1 : vector<4x256xf32>, i32 -> vector<4x256xf32>
    %17 = vector.broadcast %3 : vector<1x256xf32> to vector<4x256xf32>
    %18 = arith.mulf %16, %17 : vector<4x256xf32>
    %c255_i32 = arith.constant 255 : i32
    %19 = tpu.dynamic_rotate %13 by %c255_i32 dim 1 : vector<4x256xf32>, i32 -> vector<4x256xf32>
    %20 = vector.broadcast %5 : vector<1x256xf32> to vector<4x256xf32>
    %21 = arith.mulf %19, %20 : vector<4x256xf32>
    %c16_i32 = arith.constant 16 : i32
    %22 = tpu.dynamic_rotate %18 by %c16_i32 dim 1 : vector<4x256xf32>, i32 -> vector<4x256xf32>
    %23 = vector.broadcast %1 : vector<1x256xf32> to vector<4x256xf32>
    %24 = arith.mulf %22, %23 : vector<4x256xf32>
    %c16_i32_24 = arith.constant 16 : i32
    %25 = tpu.dynamic_rotate %13 by %c16_i32_24 dim 1 : vector<4x256xf32>, i32 -> vector<4x256xf32>
    %26 = vector.broadcast %1 : vector<1x256xf32> to vector<4x256xf32>
    %27 = arith.mulf %25, %26 : vector<4x256xf32>
    %c16_i32_25 = arith.constant 16 : i32
    %28 = tpu.dynamic_rotate %21 by %c16_i32_25 dim 1 : vector<4x256xf32>, i32 -> vector<4x256xf32>
    %29 = vector.broadcast %1 : vector<1x256xf32> to vector<4x256xf32>
    %30 = arith.mulf %28, %29 : vector<4x256xf32>
    %31 = tpu.concatenate %24, %27, %30, %18, %13, %21 in 0 : vector<4x256xf32>, vector<4x256xf32>, vector<4x256xf32>, vector<4x256xf32>, vector<4x256xf32>, vector<4x256xf32> -> vector<24x256xf32>
    %cst = arith.constant dense<0.000000e+00> : vector<8x256xf32>
    %32 = tpu.matmul %6, %31, %cst {dimension_numbers = #tpu.dot_dimension_numbers<[1], [0], [0], [1], [0, 0, 1, 1], [], []>} : vector<8x24xf32>, vector<24x256xf32>, vector<8x256xf32> -> vector<8x256xf32>
    %33 = vector.broadcast %9 : vector<8x1xf32> to vector<8x256xf32>
    %34 = arith.addf %32, %33 : vector<8x256xf32>
    %35 = vector.extract_strided_slice %34 {offsets = [0, 0], sizes = [4, 256], strides = [1, 1]} : vector<8x256xf32> to vector<4x256xf32>
    %36 = math.tanh %35 : vector<4x256xf32>
    %37 = vector.extract_strided_slice %34 {offsets = [4, 0], sizes = [4, 256], strides = [1, 1]} : vector<8x256xf32> to vector<4x256xf32>
    %cst_26 = arith.constant 5.000000e-01 : f32
    %38 = vector.broadcast %cst_26 : f32 to vector<4x256xf32>
    %39 = arith.mulf %38, %37 : vector<4x256xf32>
    %40 = math.tanh %39 : vector<4x256xf32>
    %cst_27 = arith.constant 5.000000e-01 : f32
    %41 = vector.broadcast %cst_27 : f32 to vector<4x256xf32>
    %42 = arith.mulf %41, %40 : vector<4x256xf32>
    %cst_28 = arith.constant 5.000000e-01 : f32
    %43 = vector.broadcast %cst_28 : f32 to vector<4x256xf32>
    %44 = arith.addf %42, %43 : vector<4x256xf32>
    %45 = arith.mulf %36, %44 : vector<4x256xf32>
    %c1_i32_29 = arith.constant 1 : i32
    %46 = tpu.dynamic_rotate %15 by %c1_i32_29 dim 1 : vector<4x256xf32>, i32 -> vector<4x256xf32>
    %47 = vector.broadcast %3 : vector<1x256xf32> to vector<4x256xf32>
    %48 = arith.mulf %46, %47 : vector<4x256xf32>
    %49 = tpu.concatenate %48, %15, %34 in 0 : vector<4x256xf32>, vector<4x256xf32>, vector<8x256xf32> -> vector<16x256xf32>
    %cst_30 = arith.constant dense<0.000000e+00> : vector<8x256xf32>
    %50 = tpu.matmul %7, %49, %cst_30 {dimension_numbers = #tpu.dot_dimension_numbers<[1], [0], [0], [1], [0, 0, 1, 1], [], []>} : vector<8x16xf32>, vector<16x256xf32>, vector<8x256xf32> -> vector<8x256xf32>
    %51 = vector.broadcast %10 : vector<8x1xf32> to vector<8x256xf32>
    %52 = arith.addf %50, %51 : vector<8x256xf32>
    %53 = vector.extract_strided_slice %52 {offsets = [0, 0], sizes = [4, 256], strides = [1, 1]} : vector<8x256xf32> to vector<4x256xf32>
    %54 = math.tanh %53 : vector<4x256xf32>
    %55 = vector.extract_strided_slice %52 {offsets = [4, 0], sizes = [4, 256], strides = [1, 1]} : vector<8x256xf32> to vector<4x256xf32>
    %cst_31 = arith.constant 5.000000e-01 : f32
    %56 = vector.broadcast %cst_31 : f32 to vector<4x256xf32>
    %57 = arith.mulf %56, %55 : vector<4x256xf32>
    %58 = math.tanh %57 : vector<4x256xf32>
    %cst_32 = arith.constant 5.000000e-01 : f32
    %59 = vector.broadcast %cst_32 : f32 to vector<4x256xf32>
    %60 = arith.mulf %59, %58 : vector<4x256xf32>
    %cst_33 = arith.constant 5.000000e-01 : f32
    %61 = vector.broadcast %cst_33 : f32 to vector<4x256xf32>
    %62 = arith.addf %60, %61 : vector<4x256xf32>
    %63 = arith.mulf %54, %62 : vector<4x256xf32>
    %cst_34 = arith.constant dense<0.000000e+00> : vector<4x256xf32>
    %64 = tpu.matmul %8, %63, %cst_34 {dimension_numbers = #tpu.dot_dimension_numbers<[1], [0], [0], [1], [0, 0, 1, 1], [], []>} : vector<4x4xf32>, vector<4x256xf32>, vector<4x256xf32> -> vector<4x256xf32>
    %65 = vector.broadcast %11 : vector<4x1xf32> to vector<4x256xf32>
    %66 = arith.addf %64, %65 : vector<4x256xf32>
    %67 = arith.addf %66, %15 : vector<4x256xf32>
    %c0_35 = arith.constant 0 : index
    %c0_36 = arith.constant 0 : index
    %c0_37 = arith.constant 0 : index
    %68 = vector.load %arg10[%c0_35, %c0_36, %c0_37] : memref<1x4x256xf32, #tpu.memory_space<vmem>>, vector<1x4x256xf32>
    %69 = vector.shape_cast %68 : vector<1x4x256xf32> to vector<4x256xf32>
    %70 = vector.shape_cast %45 : vector<4x256xf32> to vector<1x4x256xf32>
    tpu.vector_store %arg10[%c0_35, %c0_36, %c0_37], %70 {strides = array<i32>} : memref<1x4x256xf32, #tpu.memory_space<vmem>>, vector<1x4x256xf32>,
    %c0_38 = arith.constant 0 : index
    %c0_39 = arith.constant 0 : index
    %c0_40 = arith.constant 0 : index
    %71 = vector.load %arg11[%c0_38, %c0_39, %c0_40] : memref<1x4x256xf32, #tpu.memory_space<vmem>>, vector<1x4x256xf32>
    %72 = vector.shape_cast %71 : vector<1x4x256xf32> to vector<4x256xf32>
    %73 = vector.shape_cast %67 : vector<4x256xf32> to vector<1x4x256xf32>
    tpu.vector_store %arg11[%c0_38, %c0_39, %c0_40], %73 {strides = array<i32>} : memref<1x4x256xf32, #tpu.memory_space<vmem>>, vector<1x4x256xf32>,
    return
  }
  func.func @transform_0(%arg0: i32) -> (i32, i32, i32) {
    %c0_i32 = arith.constant 0 : i32
    %c0_i32_0 = arith.constant 0 : i32
    %c0_i32_1 = arith.constant 0 : i32
    return %arg0, %c0_i32, %c0_i32_0 : i32, i32, i32
  }
  func.func @transform_1(%arg0: i32) -> (i32, i32, i32) {
    %c0_i32 = arith.constant 0 : i32
    %c0_i32_0 = arith.constant 0 : i32
    %c0_i32_1 = arith.constant 0 : i32
    return %arg0, %c0_i32, %c0_i32_0 : i32, i32, i32
  }
  func.func @transform_2(%arg0: i32) -> (i32, i32, i32) {
    %c0_i32 = arith.constant 0 : i32
    %c0_i32_0 = arith.constant 0 : i32
    %c0_i32_1 = arith.constant 0 : i32
    %c0_i32_2 = arith.constant 0 : i32
    return %c0_i32, %c0_i32_0, %c0_i32_1 : i32, i32, i32
  }
  func.func @transform_3(%arg0: i32) -> (i32, i32) {
    %c0_i32 = arith.constant 0 : i32
    %c0_i32_0 = arith.constant 0 : i32
    %c0_i32_1 = arith.constant 0 : i32
    return %c0_i32, %c0_i32_0 : i32, i32
  }
  func.func @transform_4(%arg0: i32) -> (i32, i32) {
    %c0_i32 = arith.constant 0 : i32
    %c0_i32_0 = arith.constant 0 : i32
    %c0_i32_1 = arith.constant 0 : i32
    return %c0_i32, %c0_i32_0 : i32, i32
  }
  func.func @transform_5(%arg0: i32) -> (i32, i32) {
    %c0_i32 = arith.constant 0 : i32
    %c0_i32_0 = arith.constant 0 : i32
    %c0_i32_1 = arith.constant 0 : i32
    return %c0_i32, %c0_i32_0 : i32, i32
  }
  func.func @transform_6(%arg0: i32) -> (i32, i32) {
    %c0_i32 = arith.constant 0 : i32
    %c0_i32_0 = arith.constant 0 : i32
    %c0_i32_1 = arith.constant 0 : i32
    return %c0_i32, %c0_i32_0 : i32, i32
  }
  func.func @transform_7(%arg0: i32) -> (i32, i32) {
    %c0_i32 = arith.constant 0 : i32
    %c0_i32_0 = arith.constant 0 : i32
    %c0_i32_1 = arith.constant 0 : i32
    return %c0_i32, %c0_i32_0 : i32, i32
  }
  func.func @transform_8(%arg0: i32) -> (i32, i32) {
    %c0_i32 = arith.constant 0 : i32
    %c0_i32_0 = arith.constant 0 : i32
    %c0_i32_1 = arith.constant 0 : i32
    return %c0_i32, %c0_i32_0 : i32, i32
  }
  func.func @transform_9(%arg0: i32) -> (i32, i32, i32) {
    %c0_i32 = arith.constant 0 : i32
    %c0_i32_0 = arith.constant 0 : i32
    %c0_i32_1 = arith.constant 0 : i32
    return %arg0, %c0_i32, %c0_i32_0 : i32, i32, i32
  }
  func.func @transform_10(%arg0: i32) -> (i32, i32, i32) {
    %c0_i32 = arith.constant 0 : i32
    %c0_i32_0 = arith.constant 0 : i32
    %c0_i32_1 = arith.constant 0 : i32
    return %arg0, %c0_i32, %c0_i32_0 : i32, i32, i32
  }
}

</mosaic_0001>

<bundles_post_ra>
// kernel: _lambda_.1
= control target key start
LH: loop header
LB: loop body
LE: loop exit
PB: predicated region body
PF: predicated region fallthrough
CT: control target
= control target key end

     0   :  { %s1049_s13 = smov 0   ;;  %s1174_s0 = inlined_call_operand.vmem [shape: f32[2,4,256], index: 0, kind: input, shape index: {}]   ;;  %s1175_s1 = inlined_call_operand.vmem [shape: f32[2,4,256], index: 1, kind: input, shape index: {}]   ;;  %s1176_s2 = inlined_call_operand.vmem [shape: f32[3,1,256], index: 2, kind: input, shape index: {}]   ;;  %s1177_s3 = inlined_call_operand.vmem [shape: f32[8,24], index: 3, kind: input, shape index: {}]   ;;  %s1178_s4 = inlined_call_operand.vmem [shape: f32[8,16], index: 4, kind: input, shape index: {}]   ;;  %s1179_s5 = inlined_call_operand.vmem [shape: f32[4,4], index: 5, kind: input, shape index: {}]   ;;  %s1180_s6 = inlined_call_operand.vmem [shape: f32[8,1], index: 6, kind: input, shape index: {}]   ;;  %s1181_s7 = inlined_call_operand.vmem [shape: f32[8,1], index: 7, kind: input, shape index: {}]   ;;  %s1182_s8 = inlined_call_operand.vmem [shape: f32[4,1], index: 8, kind: input, shape index: {}]   ;;  %s1183_s9 = inlined_call_operand.vmem [shape: f32[2,4,256], index: 9, kind: output, shape index: {0}]   ;;  %s1184_s10 = inlined_call_operand.vmem [shape: f32[2,4,256], index: 10, kind: output, shape index: {1}]  }
   0x1 LB: > { %s921_s14 = sadd.s32 4294967295, %s987_s13   ;;  %p925_p0 = scmp.ge.s32.totalorder %s987_s13, 1  ;;  %s987_s13 = sphi %s1049_s13, %s21_s13  }
   0x2   : > { %p325_p1 = scmp.lt.s32.totalorder %s987_s13, 3 }
   0x4   : > { %p326_p2 = pnand %p925_p0, %p325_p1 }
   0x5   : > { %p373_p3 = scmp.lt.s32.totalorder (!%p326_p2), %s921_s14, 1  ;;  %s989_s19 = smov (!%p326_p2), 1  }
   0x6   : > { %329 = sbr.rel (%p326_p2) target bundleno = 888 (0x378), region = 56  ;;  %s990_s20 = smov (!%p326_p2), 127  }
   0x7   : > { %s991_s21 = smov (!%p326_p2), 16  }
   0xb   : > { %s1186_s14 = smov (!%p373_p3, %s921_s14), 1  ;;  %v413_v2 = vlaneseq  ;;  %v935_v7 = vld [vmem:[%s1176_s2 + $0x4] sm:$0x3]  ;;  %v934_v10 = vld [vmem:[%s1176_s2 + $0x2] sm:$0x3]  ;;  %v992_v22 = vmov 0.0  }
   0xc   : > { %s1057_s15 = sshll.u32 %s1186_s14, 3  ;;  %v393_v13 = vld [vmem:[%s1176_s2] sm:$0x3]  ;;  %585 = vmatprep.mubr.f32.mxu0 %v992_v22  ;;  %698 = vmatprep.mubr.f32.mxu1 %v992_v22  ;;  %vm505_vm3 = vcmask 1043456   ;;  %v993_v35 = vmov 0   ;;  %vm517_vm4 = vcmask 195584  }
   0xd   : > { %s377_s18 = scalar_lea.vmem %s1174_s0, %s1057_s15  ;;  %v420_v3 = vshrl.u32 %v413_v2, 7  ;;  %v1067_v4 = vand.u32 127, %v413_v2  ;;  %960 = vset.pattern.permute.xlu0 %v993_v35  ;;  %961 = vset.pattern.permute.xlu1 %v993_v35  ;;  %s382_s30 = scalar_lea.vmem %s1175_s1, %s1057_s15  ;;  %v401_v40 = vld [vmem:[%s1180_s6] sm:$0xff]  ;;  %vm630_vm5 = vcmask 130048   ;;  %vm728_vm6 = vcmask 31744  }
   0xe   : > { %v404_v0 = vld [vmem:[%s377_s18] sm:$0xff]  ;;  %s387_s23 = scalar_lea.vmem %s1183_s9, %s1057_s15 }
   0xf   : > { %409 = vrot.lane.b32.xlu1 %v404_v0, %s989_s19  ;;  %431 = vrot.lane.b32.xlu0 %v404_v0, %s990_s20  ;;  %v407_v1 = vcombine.high %v404_v0, %v404_v0  ;;  %v421_v5 = vsub.s32 0, %v420_v3  ;;  %v425_v6 = vsub.s32 1, %v420_v3  ;;  %vm415_vm0 = vcmp.lt.s32.totalorder %v1067_v4, 1  ;;  %v1110_v41 = vld [vmem:[%s382_s30] sm:$0xff]  ;;  %s392_s30 = scalar_lea.vmem %s1184_s10, %s1057_s15 }
  0x10   : > { %vm435_vm1 = vcmp.lt.s32.totalorder %v1067_v4, 127  ;;  %vm455_vm2 = vcmp.lt.s32.totalorder %v1067_v4, 16  ;;  %v1116_v42 = vcombine.high %v1110_v41, %v1110_v41  ;;  %v402_v43 = vld [vmem:[%s1181_s7] sm:$0xff] }
  0x11   : > { %v442_v11 = vrot.slane %v935_v7, %v421_v5  ;;  %v446_v12 = vrot.slane %v935_v7, %v425_v6  ;;  %v1080_v14 = vrot.slane %v934_v10, %v421_v5  ;;  %v1082_v15 = vrot.slane %v934_v10, %v425_v6 }
  0x12   : > { %v462_v21 = vrot.slane %v393_v13, %v421_v5  ;;  %v466_v26 = vrot.slane %v393_v13, %v425_v6 }
  0x13   : > { %411 = vrot.lane.b32.xlu1 %v407_v1, %s989_s19  ;;  %433 = vrot.lane.b32.xlu0 %v407_v1, %s990_s20 }
  0x17   : > { %473 = vrot.lane.b32.xlu1 %v407_v1, %s991_s21  ;;  %471 = vrot.lane.b32.xlu0 %v404_v0, %s991_s21 }
  0x81   : > { %v410_v8 = vpop.permute.xlu1 %409  ;;  %v432_v9 = vpop.permute.xlu0 %431 }
  0x85   : > { %v412_v16 = vpop.permute.xlu1 %411  ;;  %v434_v17 = vpop.permute.xlu0 %433 }
  0x86   : > { %v417_v18 = vsel %vm415_vm0, %v412_v16, %v410_v8  ;;  %v436_v19 = vsel %vm435_vm1, %v432_v9, %v434_v17  ;;  %v437_v20 = vsel %vm435_vm1, %v434_v17, %v432_v9  ;;  %v416_v23 = vsel %vm415_vm0, %v410_v8, %v412_v16 }
  0x87   : > { %v449_v24 = vmul.f32 %v442_v11, %v436_v19  ;;  %v450_v25 = vmul.f32 %v446_v12, %v437_v20  ;;  %v429_v27 = vmul.f32 %v1080_v14, %v417_v18  ;;  %v430_v32 = vmul.f32 %v1082_v15, %v416_v23  ;;  %v399_v18 = vld [vmem:[%s1178_s4] sm:$0xff] }
  0x88   : > { %v621_v16 = vcombine.low %v1110_v41, %v1110_v41 }
  0x89   : > { %v501_v28 = vrot.slane %v449_v24, 4  ;;  %481 = vrot.lane.b32.xlu1 %v450_v25, %s991_s21  ;;  %479 = vrot.lane.b32.xlu0 %v449_v24, %s991_s21  ;;  %v502_v29 = vrot.slane %v450_v25, 4  ;;  %v474_v30 = vpop.permute.xlu1 %473  ;;  %v472_v31 = vpop.permute.xlu0 %471  ;;  %v495_v48 = vrot.slane %v429_v27, 4  ;;  %v496_v49 = vrot.slane %v430_v32, 4 }
  0x8a   : > { %v475_v33 = vsel %vm455_vm2, %v472_v31, %v474_v30  ;;  %v476_v34 = vsel %vm455_vm2, %v474_v30, %v472_v31 }
  0x8b   : > { %v511_v36 = vsel %vm505_vm3, %v407_v1, %v502_v29  ;;  %v510_v37 = vsel %vm505_vm3, %v404_v0, %v501_v28  ;;  %v477_v38 = vmul.f32 %v476_v34, %v462_v21  ;;  %v478_v39 = vmul.f32 %v475_v33, %v466_v26  ;;  %v398_v0 = vld [vmem:[%s1177_s3] sm:$0xff] }
  0x8c   : > { %547 = vmatprep.subr.mxu0 %v511_v36 }
  0x8d   : > { %453 = vrot.lane.b32.xlu1 %v430_v32, %s991_s21  ;;  %451 = vrot.lane.b32.xlu0 %v429_v27, %s991_s21  ;;  %v489_v58 = vrot.slane %v477_v38, 4  ;;  %v490_v59 = vrot.slane %v478_v39, 4 }
  0x8e   : > { %548 = vmatpush1.msra.mxu0 %v510_v37 }
  0x91   : > { %514 = vperm.xlu0 %960, %v401_v40   ;;  %613 = vrot.lane.b32.xlu1 %v1110_v41, %s989_s19 }
  0x95   : > { %627 = vperm.xlu0 %960, %v402_v43   ;;  %615 = vrot.lane.b32.xlu1 %v1116_v42, %s989_s19 }
  0xfb   : > { %v482_v44 = vpop.permute.xlu1 %481  ;;  %v480_v45 = vpop.permute.xlu0 %479 }
  0xfc   : > { %v483_v46 = vsel %vm455_vm2, %v480_v45, %v482_v44  ;;  %v484_v47 = vsel %vm455_vm2, %v482_v44, %v480_v45 }
  0xfd   : > { %v485_v50 = vmul.f32 %v484_v47, %v462_v21  ;;  %v486_v51 = vmul.f32 %v483_v46, %v466_v26 }
  0xff   : > { %v454_v52 = vpop.permute.xlu1 %453  ;;  %v452_v53 = vpop.permute.xlu0 %451  ;;  %v509_v54 = vsel %vm505_vm3, %v486_v51, %v496_v49  ;;  %v508_v55 = vsel %vm505_vm3, %v485_v50, %v495_v48 }
 0x100   : > { %v456_v56 = vsel %vm455_vm2, %v452_v53, %v454_v52  ;;  %v457_v57 = vsel %vm455_vm2, %v454_v52, %v452_v53  ;;  %549 = vmatprep.subr.mxu0 %v509_v54  ;;  %v400_v53 = vld [vmem:[%s1179_s5] sm:$0xf] }
 0x101   : > { %v469_v60 = vmul.f32 %v462_v21, %v457_v57  ;;  %v470_v61 = vmul.f32 %v466_v26, %v456_v56  ;;  %550 = vmatpush1.msra.mxu0 %v508_v55 }
 0x103   : > { %v507_v62 = vsel %vm505_vm3, %v470_v61, %v490_v59  ;;  %v506_v63 = vsel %vm505_vm3, %v469_v60, %v489_v58  ;;  %v614_v1 = vpop.permute.xlu1 %613 }
 0x104   : > { %551 = vmatprep.subr.mxu0 %v507_v62 }
 0x105   : > { %552 = vmatpush1.msra.mxu0 %v506_v63 }
 0x106   : > { %936 = vmatmul.mubr.msk.f32.vlgmr.msra.gmra.mxu0 %vm517_vm4, %v398_v0 }
 0x107   : > { %v616_v2 = vpop.permute.xlu1 %615 }
 0x108   : > { %v617_v3 = vsel %vm415_vm0, %v614_v1, %v616_v2  ;;  %v618_v5 = vsel %vm415_vm0, %v616_v2, %v614_v1 }
 0x109   : > { %v620_v9 = vmul.f32 %v617_v3, %v1082_v15  ;;  %v619_v11 = vmul.f32 %v618_v5, %v1080_v14 }
 0x10b   : > { %v624_v4 = vsel %vm505_vm3, %v620_v9, %v1110_v41  ;;  %v623_v14 = vsel %vm505_vm3, %v619_v11, %v621_v16 }
 0x10c   : > { %v515_v6 = vpop.permute.xlu0 %514 }
 0x110   : > { %v628_v32 = vpop.permute.xlu0 %627 }
 0x1c6   : > { %v587_v7 = vpop.f32.mrf.mxu0 }
 0x1c7   : > { %v588_v8 = vadd.f32 %v587_v7, %v515_v6 }
 0x1c8   : > { %v589_v10 = vpop.f32.mrf.mxu0 }
 0x1c9   : > { %v594_v12 = vmul.f32 0.5, %v588_v8  ;;  %v590_v13 = vadd.f32 %v589_v10, %v515_v6 }
 0x1cb   : > { %965 = vtanh.f32 %v594_v12  ;;  %v595_v17 = vmul.f32 0.5, %v590_v13  ;;  %662 = vmatprep.subr.mxu1 %v590_v13 }
 0x1cc   : > { %663 = vmatpush1.msra.mxu1 %v588_v8 }
 0x1cd   : > { %967 = vtanh.f32 %v595_v17  ;;  %664 = vmatprep.subr.mxu1 %v624_v4 }
 0x1ce   : > { %665 = vmatpush1.msra.mxu1 %v623_v14  ;;  %969 = vtanh.f32 %v588_v8 }
 0x1cf   : > { %937 = vmatmul.mubr.msk.f32.vlgmr.msra.gmra.mxu1 %vm630_vm5, %v399_v18  ;;  %971 = vtanh.f32 %v590_v13 }
 0x1d0   : > { %802 = vmatprep.mubr.f32.mxu1 %v992_v22  ;;  %v403_v22 = vld [vmem:[%s1182_s8] sm:$0xf] }
 0x1d1   : > { %725 = vperm.xlu1 %961, %v403_v22  }
 0x1d8   : > { %v966_v15 = vpop.eup %965 }
 0x1d9   : > { %v598_v19 = vmul.f32 0.5, %v966_v15 }
 0x1da   : > { %v968_v20 = vpop.eup %967 }
 0x1db   : > { %v600_v21 = vadd.f32 0.5, %v598_v19  ;;  %v599_v23 = vmul.f32 0.5, %v968_v20  ;;  %v970_v26 = vpop.eup %969 }
 0x1dc   : > { %v972_v28 = vpop.eup %971 }
 0x1dd   : > { %v604_v24 = vrot.slane %v600_v21, 4  ;;  %v601_v25 = vadd.f32 0.5, %v599_v23 }
 0x1df   : > { %v605_v27 = vrot.slane %v601_v25, 4  ;;  %v608_v29 = vmul.f32 %v970_v26, %v604_v24 }
 0x1e1   : > { %v609_v30 = vmul.f32 %v972_v28, %v605_v27 }
 0x1e3   : > { %v813_v31 = vcombine.low %v608_v29, %v609_v30 }
 0x1e5   : > { %815 = vst [vmem:[%s387_s23] sm:$0xff] %v813_v31 }
 0x24c   : > { %v726_v54 = vpop.permute.xlu1 %725 }
 0x28f   : > { %v700_v33 = vpop.f32.mrf.mxu1 }
 0x290   : > { %v701_v34 = vadd.f32 %v700_v33, %v628_v32 }
 0x291   : > { %v702_v35 = vpop.f32.mrf.mxu1 }
 0x292   : > { %v707_v36 = vmul.f32 0.5, %v701_v34  ;;  %v703_v37 = vadd.f32 %v702_v35, %v628_v32 }
 0x294   : > { %973 = vtanh.f32 %v707_v36  ;;  %v708_v38 = vmul.f32 0.5, %v703_v37 }
 0x296   : > { %975 = vtanh.f32 %v708_v38 }
 0x297   : > { %977 = vtanh.f32 %v703_v37 }
 0x298   : > { %979 = vtanh.f32 %v701_v34 }
 0x2a1   : > { %v974_v39 = vpop.eup %973 }
 0x2a2   : > { %v711_v40 = vmul.f32 0.5, %v974_v39 }
 0x2a3   : > { %v976_v43 = vpop.eup %975 }
 0x2a4   : > { %v713_v44 = vadd.f32 0.5, %v711_v40  ;;  %v712_v45 = vmul.f32 0.5, %v976_v43  ;;  %v978_v49 = vpop.eup %977 }
 0x2a5   : > { %v980_v50 = vpop.eup %979 }
 0x2a6   : > { %v714_v46 = vadd.f32 0.5, %v712_v45  ;;  %v717_v47 = vrot.slane %v713_v44, 4 }
 0x2a8   : > { %v718_v48 = vrot.slane %v714_v46, 4  ;;  %v721_v52 = vmul.f32 %v980_v50, %v717_v47 }
 0x2aa   : > { %v722_v51 = vmul.f32 %v978_v49, %v718_v48 }
 0x2ac   : > { %938 = vmatprep.subr.msk.mxu1 %vm505_vm3, %v722_v51 }
 0x2ad   : > { %939 = vmatpush1.msk.msra.mxu1 %vm505_vm3, %v721_v52 }
 0x2ae   : > { %940 = vmatmul.mubr.msk.f32.vlgmr.msra.gmra.mxu1 %vm728_vm6, %v400_v53 }
 0x36e   : > { %v804_v55 = vpop.f32.mrf.mxu1 }
 0x36f   : > { %v805_v56 = vadd.f32 %v804_v55, %v726_v54 }
 0x370   : > { %v806_v57 = vpop.f32.mrf.mxu1 }
 0x371   : > { %v807_v58 = vadd.f32 %v806_v57, %v726_v54  ;;  %v809_v59 = vadd.f32 %v805_v56, %v1110_v41 }
 0x373   : > { %v810_v60 = vadd.f32 %v807_v58, %v1116_v42 }
 0x375   : > { %v818_v61 = vcombine.low %v809_v59, %v810_v60 }
 0x377   : > { %820 = vst [vmem:[%s392_s30] sm:$0xff] %v818_v61 }
 0x378 PF: > { %s21_s13 = sadd.s32 1, %s987_s13  }
 0x379   : > { %p18_p4 = scmp.ge.s32.totalorder %s21_s13, 4  }
 0x37b   :  { %20 = sbr.rel (!%p18_p4) target bundleno = 1 (0x1), region = 103 }

</bundles_post_ra>
